<compile_context>
chip_gen: v6e
topology: v6e:2x2x1
jax: 0.10.0
libtpu: 0.0.40
codegen_flags: <defaults>
</compile_context>

<pallas_src>
import jax
import jax.numpy as jnp
from jax.experimental import pallas as pl
from jax.experimental.pallas import tpu as pltpu


def _round_up(x, m):
    return ((x + m - 1) // m) * m


def _vmem_budget_bytes():
    try:
        cap = int(pltpu.get_tpu_info().vmem_capacity_bytes)
    except Exception:
        cap = 64 * 1024 * 1024  # conservative: v7x per-TC VMEM
    return max(16 * 1024 * 1024, cap * 7 // 8)  # headroom for compiler scratch


def _pick_row_tile(M, row_align, cap=512):
    full = _round_up(M, row_align)
    if full <= cap:
        return full
    candidates = [c for c in (512, 448, 384, 320, 256, 192, 128, 96, 64)
                  if c % row_align == 0 and c <= cap]
    # minimise padded rows; prefer larger tiles on a tie
    return min(candidates, key=lambda t: (_round_up(M, t) - M, -t))


def _sine_layer_kernel(x_ref, w_ref, b_ref, o_ref):
    # x: (tm, K) io_dtype; w: (K, tn) io_dtype (omega pre-folded, pre-transposed)
    # b: (1, tn) f32 (omega pre-folded); out: (tm, tn) io_dtype.
    y = jnp.dot(x_ref[...], w_ref[...], preferred_element_type=jnp.float32)
    o_ref[...] = jnp.sin(y + b_ref[...]).astype(o_ref.dtype)


def sine_layer(x, weight, bias, omega=30.0, *, io_dtype=None, tm_cap=512):
    """sin(omega * (x @ weight.T + bias)).
    x: (M, K); weight: (N, K) torch layout; bias: (N,). Returns (M, N)."""
    M, K = x.shape
    N, K2 = weight.shape
    assert K == K2
    assert bias.shape == (N,)

    io_dtype = jnp.dtype(io_dtype) if io_dtype is not None else jnp.dtype(x.dtype)
    in_is = io_dtype.itemsize
    row_align = 8 if in_is >= 4 else 16   # sublane packing for sub-32-bit dtypes

    # Fold omega into W / b once, in f32, before any low-precision cast;
    # transpose W once to (K, N) so the kernel matmul needs no transpose.
    w_t = (weight.astype(jnp.float32) * float(omega)).T.astype(io_dtype)  # (K, N)
    b_s = (bias.astype(jnp.float32) * float(omega)).reshape(1, N)         # tiny, f32

    # ---- tile selection -----------------------------------------------------
    tm = _pick_row_tile(M, row_align, tm_cap)
    tn = _round_up(N, 128)          # default: full width -> W resident in VMEM

    def vmem_est(tm_, tn_):
        return (2 * tm_ * K * in_is         # x tiles (double-buffered)
                + 2 * K * tn_ * in_is       # W tile(s)
                + 2 * tn_ * 4               # bias tile(s)
                + 2 * tm_ * tn_ * in_is     # out tiles
                + 2 * 1024 * 1024)          # slack for compiler temporaries

    budget = _vmem_budget_bytes()
    while vmem_est(tm, tn) > budget and tn > 128:
        tn = max(128, _round_up(tn // 2, 128))
    while vmem_est(tm, tn) > budget and tm > row_align:
        tm = max(row_align, _round_up(tm // 2, row_align))

    Mp = _round_up(M, tm)
    Np = _round_up(N, tn)

    # Give both v7x TensorCores work when the grid would otherwise be (1, 1).
    if Mp // tm == 1 and Np // tn == 1 and tm % (2 * row_align) == 0:
        tm //= 2

    # ---- padding (minimal; sliced off below) --------------------------------
    xp = x.astype(io_dtype)
    if Mp != M:
        xp = jnp.pad(xp, ((0, Mp - M), (0, 0)))
    wp = w_t if Np == N else jnp.pad(w_t, ((0, 0), (0, Np - N)))
    bp = b_s if Np == N else jnp.pad(b_s, ((0, 0), (0, Np - N)))

    cost = pl.CostEstimate(
        flops=2 * M * N * K,
        transcendentals=M * N,
        bytes_accessed=(M * K + K * N + M * N) * in_is + N * 4,
    )
    vmem_limit = int(min(budget, max(32 * 1024 * 1024, 2 * vmem_est(tm, tn))))

    out = pl.pallas_call(
        _sine_layer_kernel,
        out_shape=jax.ShapeDtypeStruct((Mp, Np), io_dtype),
        grid_spec=pl.GridSpec(
            grid=(Mp // tm, Np // tn),
            in_specs=[
                pl.BlockSpec((tm, K), lambda i, j: (i, 0)),  # x row tile (resident over j)
                pl.BlockSpec((K, tn), lambda i, j: (0, j)),  # omega*W^T; index constant when tn==Np -> DMA'd once
                pl.BlockSpec((1, tn), lambda i, j: (0, j)),  # omega*bias (f32)
            ],
            out_specs=pl.BlockSpec((tm, tn), lambda i, j: (i, j)),
        ),
        compiler_params=pltpu.CompilerParams(
            dimension_semantics=("parallel", "parallel"),
            vmem_limit_bytes=vmem_limit,
        ),
        cost_estimate=cost,
    )(xp, wp, bp)

    if (Mp, Np) != (M, N):
        out = out[:M, :N]
    return out


def siren_init(key, out_features, in_features, is_first=False, omega=30.0):
    """Deterministic SIREN weight init (matches siren_init_ semantics)."""
    if is_first:
        bound = 1.0 / in_features
    else:
        bound = float(jnp.sqrt(6.0 / in_features) / omega)
    return jax.random.uniform(
        key, (out_features, in_features), jnp.float32,
        minval=-bound, maxval=bound)


if __name__ == "__main__":
    key = jax.random.PRNGKey(0)
    k_x, k_w, k_b = jax.random.split(key, 3)

    batch = 8
    in_features = 32
    out_features = 32
    omega = 30.0

    x = jax.random.normal(k_x, (batch, in_features), jnp.float32)
    weight = siren_init(k_w, out_features, in_features,
                        is_first=False, omega=omega)
    # nn.Linear default bias init: uniform(-1/sqrt(in), 1/sqrt(in))
    b_bound = 1.0 / float(jnp.sqrt(in_features))
    bias = jax.random.uniform(k_b, (out_features,), jnp.float32,
                              minval=-b_bound, maxval=b_bound)

    out = sine_layer(x, weight, bias, omega=omega)
    out = jax.block_until_ready(out)

    # Reference check in plain JAX (original module semantics).
    ref = jnp.sin(omega * (x @ weight.T + bias))
    assert out.shape == (batch, out_features)
    assert jnp.allclose(out, ref, atol=1e-4, rtol=1e-4)

    print("KERNEL_OK")
</pallas_src>

<mosaic_0001>
module attributes {stable_mosaic.version = 11 : i64} {
  func.func @_sine_layer_kernel(%arg0: i32, %arg1: i32, %arg2: memref<8x32xf32, #tpu.memory_space<vmem>>, %arg3: memref<32x128xf32, #tpu.memory_space<vmem>>, %arg4: memref<1x128xf32, #tpu.memory_space<vmem>>, %arg5: memref<8x128xf32, #tpu.memory_space<vmem>>) attributes {dimension_semantics = [#tpu.dimension_semantics<parallel>, #tpu.dimension_semantics<parallel>], iteration_bounds = array<i64: 1, 1>, scalar_prefetch = 0 : i64, scratch_operands = 0 : i64, tpu.core_type = #tpu.core_type<tc>, window_params = [{transform_indices = @transform_0, window_bounds = array<i64: 8, 32>}, {transform_indices = @transform_1, window_bounds = array<i64: 32, 128>}, {transform_indices = @transform_2, window_bounds = array<i64: 1, 128>}, {transform_indices = @transform_3, window_bounds = array<i64: 8, 128>}]} {
    %c0 = arith.constant 0 : index
    %c0_0 = arith.constant 0 : index
    %0 = vector.load %arg2[%c0, %c0_0] : memref<8x32xf32, #tpu.memory_space<vmem>>, vector<8x32xf32>
    %c0_1 = arith.constant 0 : index
    %c0_2 = arith.constant 0 : index
    %1 = vector.load %arg3[%c0_1, %c0_2] : memref<32x128xf32, #tpu.memory_space<vmem>>, vector<32x128xf32>
    %cst = arith.constant dense<0.000000e+00> : vector<8x128xf32>
    %2 = tpu.matmul %0, %1, %cst {dimension_numbers = #tpu.dot_dimension_numbers<[1], [0], [0], [1], [0, 0, 1, 1], [], []>} : vector<8x32xf32>, vector<32x128xf32>, vector<8x128xf32> -> vector<8x128xf32>
    %c0_3 = arith.constant 0 : index
    %c0_4 = arith.constant 0 : index
    %3 = vector.load %arg4[%c0_3, %c0_4] : memref<1x128xf32, #tpu.memory_space<vmem>>, vector<1x128xf32>
    %4 = vector.broadcast %3 : vector<1x128xf32> to vector<8x128xf32>
    %5 = arith.addf %2, %4 : vector<8x128xf32>
    %6 = math.sin %5 : vector<8x128xf32>
    %c0_5 = arith.constant 0 : index
    %c0_6 = arith.constant 0 : index
    %7 = vector.load %arg5[%c0_5, %c0_6] : memref<8x128xf32, #tpu.memory_space<vmem>>, vector<8x128xf32>
    tpu.vector_store %arg5[%c0_5, %c0_6], %6 {strides = array<i32>} : memref<8x128xf32, #tpu.memory_space<vmem>>, vector<8x128xf32>,
    return
  }
  func.func @transform_0(%arg0: i32, %arg1: i32) -> (i32, i32) {
    %c0_i32 = arith.constant 0 : i32
    %c0_i32_0 = arith.constant 0 : i32
    return %arg0, %c0_i32 : i32, i32
  }
  func.func @transform_1(%arg0: i32, %arg1: i32) -> (i32, i32) {
    %c0_i32 = arith.constant 0 : i32
    %c0_i32_0 = arith.constant 0 : i32
    return %c0_i32, %arg1 : i32, i32
  }
  func.func @transform_2(%arg0: i32, %arg1: i32) -> (i32, i32) {
    %c0_i32 = arith.constant 0 : i32
    %c0_i32_0 = arith.constant 0 : i32
    return %c0_i32, %arg1 : i32, i32
  }
  func.func @transform_3(%arg0: i32, %arg1: i32) -> (i32, i32) {
    %c0_i32 = arith.constant 0 : i32
    return %arg0, %arg1 : i32, i32
  }
}

</mosaic_0001>

<bundles_post_ra>
// kernel: tpu_custom_call.1
= control target key start
LH: loop header
LB: loop body
LE: loop exit
PB: predicated region body
PF: predicated region fallthrough
CT: control target
= control target key end

     0   :  { %8 = vsyncpa [#allocation3], 0  ;;  %s423_s0 = inlined_call_operand.hbm [shape: f32[8,32], index: 0, kind: input, shape index: {}]   ;;  %s424_s1 = inlined_call_operand.hbm [shape: f32[32,128], index: 1, kind: input, shape index: {}]   ;;  %s425_s2 = inlined_call_operand.vmem [shape: f32[1,128], index: 2, kind: input, shape index: {}]   ;;  %s426_s3 = inlined_call_operand.hbm [shape: f32[8,128], index: 3, kind: output, shape index: {}]  }
   0x1   :  { %9 = vsyncpa [#allocation6], 0 }
   0x2   :  { %10 = vsyncpa [#allocation4], 0  ;;  %s357_s12 = smov [#allocation2]   ;;  %s358_s14 = smov [#allocation5]  }
   0x3   :  { %s17_s13 = sshll.u32 %s357_s12, 4  ;;  %s26_s15 = sshll.u32 %s358_s14, 4  ;;  %s18_s13 = int_to_ptr.vmem [resolvable:$true] %s17_s13  ;;  %s27_s15 = int_to_ptr.vmem [resolvable:$true] %s26_s15 }
   0x4   :  { %s299_s16 = scalar_lea.vmem %s18_s13, 128  ;;  %p304_p1 = scmp.lt.s32.totalorder %s18_s13, %s18_s13 }
   0x5   :  { %p300_p0 = scmp.ne.s32.totalorder %s18_s13, %s299_s16  ;;  %p305_p2 = scmp.lt.s32.totalorder %s299_s16, %s299_s16 }
   0x7   :  { %p306_p3 = por %p305_p2, %p304_p1 }
   0x9   :  { %p307_p4 = pnand %p306_p3, %p300_p0 }
   0xb   :  { %310 = shalt.err (!%p307_p4)
}
   0xc   :  { %20 = dma.hbm_to_vmem [thread:$0]  %s423_s0, 128, %s18_s13, [#allocation3]  }
   0xd   :  { %s319_s19 = scalar_lea.vmem %s27_s15, 512  ;;  %p324_p6 = scmp.lt.s32.totalorder %s27_s15, %s27_s15 }
   0xe   :  { %p320_p5 = scmp.ne.s32.totalorder %s27_s15, %s319_s19  ;;  %p325_p7 = scmp.lt.s32.totalorder %s319_s19, %s319_s19 }
  0x10   :  { %p326_p8 = por %p325_p7, %p324_p6 }
  0x12   :  { %p327_p9 = pnand %p326_p8, %p320_p5 }
  0x14   :  { %330 = shalt.err (!%p327_p9)
}
  0x15   :  { %s359_s20 = smov 128   ;;  %s360_s21 = smov 8  }
  0x16   :  { %32 = dma.hbm_to_vmem [thread:$0]  %s424_s1, 512, %s27_s15, [#allocation6], %s359_s20, %s359_s20, %s360_s21  }
  0x17   :  { %351 = dma.done.wait [#allocation3], 128  }
  0x18   :  { %352 = vsyncadd [#allocation3], 4294967168 }
  0x19   :  { %353 = dma.done.wait [#allocation6], 512  }
  0x1a   :  { %354 = vsyncadd [#allocation6], 4294966784  ;;  %v361_v0 = vmov 0.0   ;;  %vm362_vm0 = vmmov 0   ;;  %v45_v1 = vld [vmem:[#allocation5 + $0x18] sm:$0xff]  ;;  %v44_v2 = vld [vmem:[#allocation5 + $0x10] sm:$0xff] }
  0x1b   :  { %259 = vmatprep.subr.mxu0 %v361_v0  ;;  %267 = vmatprep.mubr.msk.f32.mxu0 %vm362_vm0, %v361_v0  ;;  %v43_v3 = vld [vmem:[#allocation5 + $0x8] sm:$0xff]  ;;  %v42_v4 = vld [vmem:[#allocation5] sm:$0xff]  ;;  %v41_v5 = vld [vmem:[#allocation2] sm:$0xff]  ;;  %vm53_vm1 = vcmask 261120   ;;  %v363_v20 = vmov 683565275  }
  0x1c   :  { %260 = vmatpush3.msra.mxu0 %v45_v1  ;;  %v248_v6 = vld [vmem:[%s425_s2] ss:$0 sm:$0xff]  ;;  %v364_v22 = vmov 2475754826   ;;  %v365_v25 = vmov 2131351028  }
  0x1d   :  { %261 = vmatprep.subr.mxu0 %v361_v0  ;;  %v366_v28 = vmov 2102212464   ;;  %v367_v31 = vmov 920167782   ;;  %v368_v34 = vmov 1326507024  }
  0x1e   :  { %262 = vmatpush3.msra.mxu0 %v44_v2  ;;  %s369_s2 = smov [#allocation7]  }
  0x1f   :  { %263 = vmatprep.subr.mxu0 %v361_v0  ;;  %s238_s24 = sshll.u32 %s369_s2, 4  ;;  %s239_s24 = int_to_ptr.vmem [resolvable:$true] %s238_s24 }
  0x20   :  { %264 = vmatpush3.msra.mxu0 %v43_v3  ;;  %s331_s25 = scalar_lea.vmem %s239_s24, 128  ;;  %p336_p11 = scmp.lt.s32.totalorder %s239_s24, %s239_s24 }
  0x21   :  { %265 = vmatprep.subr.mxu0 %v361_v0  ;;  %p332_p10 = scmp.ne.s32.totalorder %s239_s24, %s331_s25  ;;  %p337_p12 = scmp.lt.s32.totalorder %s331_s25, %s331_s25 }
  0x22   :  { %266 = vmatpush3.msra.mxu0 %v42_v4 }
  0x23   :  { %268 = vmatmul.mubr.msk.f32.vlgmr.msra.gmra.mxu0 %vm53_vm1, %v41_v5  ;;  %p338_p13 = por %p337_p12, %p336_p11 }
  0x25   :  { %p339_p0 = pnand %p338_p13, %p332_p10 }
  0xe3   :  { %v123_v7 = vpop.f32.mrf.mxu0 }
  0xe4   :  { %v399_v8 = vadd.f32 %v248_v6, %v123_v7 }
  0xe5   :  { %v269_v9 = vpop.f32.mrf.mxu0 }
  0xe6   :  { %v130_v10 = vand.u32 2139095040, %v399_v8  ;;  %v127_v14 = vand.u32 2147483647, %v399_v8  ;;  %vm129_vm9 = vcmp.lt.s32.totalorder %v399_v8, 0  ;;  %vm219_vm14 = vweird.f32 %v399_v8 }
  0xe8   :  { %v131_v11 = vshrl.u32 %v130_v10, 23  ;;  %v134_v17 = vand.u32 8388607, %v127_v14  ;;  %vm128_vm10 = vcmp.le.f32.partialorder %v127_v14, 0.7853982 }
  0xea   :  { %v250_v12 = vadd.s32 4294967169, %v131_v11  ;;  %v135_v36 = vor.u32 8388608, %v134_v17 }
  0xec   :  { %v137_v13 = vadd.s32 1, %v250_v12  ;;  %v175_v50 = vshll.u32 %v135_v36, 8 }
  0xee   :  { %vm138_vm2 = vcmp.gt.s32.totalorder %v137_v13, 0 }
  0xef   :  { %v139_v15 = vsel %vm138_vm2, %v137_v13, 0 }
  0xf0   :  { %v141_v16 = vand.u32 31, %v139_v15  ;;  %v140_v19 = vshrl.u32 %v139_v15, 5 }
  0xf2   :  { %v142_v18 = vsub.s32 32, %v141_v16  ;;  %v144_v21 = vshll.u32 %v363_v20, %v141_v16  ;;  %v147_v23 = vshll.u32 %v364_v22, %v141_v16  ;;  %v150_v27 = vshll.u32 %v365_v25, %v141_v16 }
  0xf3   :  { %v153_v30 = vshll.u32 %v366_v28, %v141_v16  ;;  %v156_v33 = vshll.u32 %v367_v31, %v141_v16  ;;  %vm159_vm3 = vcmp.lt.s32.totalorder %v140_v19, 1  ;;  %vm162_vm4 = vcmp.lt.s32.totalorder %v140_v19, 4 }
  0xf4   :  { %v145_v24 = vshrl.u32 %v364_v22, %v142_v18  ;;  %v148_v26 = vshrl.u32 %v365_v25, %v142_v18  ;;  %v151_v29 = vshrl.u32 %v366_v28, %v142_v18  ;;  %v154_v32 = vshrl.u32 %v367_v31, %v142_v18 }
  0xf5   :  { %v157_v35 = vshrl.u32 %v368_v34, %v142_v18  ;;  %v143_v45 = vshrl.u32 %v363_v20, %v142_v18  ;;  %vm161_vm5 = vcmp.lt.s32.totalorder %v140_v19, 3  ;;  %vm160_vm6 = vcmp.lt.s32.totalorder %v140_v19, 2 }
  0xf6   :  { %v146_v37 = vor.u32 %v145_v24, %v144_v21  ;;  %v149_v38 = vor.u32 %v148_v26, %v147_v23  ;;  %v152_v39 = vor.u32 %v151_v29, %v150_v27  ;;  %v155_v40 = vor.u32 %v154_v32, %v153_v30 }
  0xf7   :  { %v158_v41 = vor.u32 %v157_v35, %v156_v33 }
  0xf8   :  { %v164_v42 = vsel %vm162_vm4, %v152_v39, 2102212464  ;;  %v167_v43 = vsel %vm159_vm3, %v146_v37, %v149_v38  ;;  %v171_v44 = vsel %vm159_vm3, %v149_v38, %v152_v39  ;;  %v168_v46 = vsel %vm162_vm4, %v155_v40, 920167782 }
  0xf9   :  { %v172_v47 = vsel %vm162_vm4, %v158_v41, 1326507024  ;;  %v169_v48 = vsel %vm161_vm5, %v152_v39, %v168_v46  ;;  %v163_v51 = vsel %vm159_vm3, %v143_v45, %v146_v37  ;;  %v165_v52 = vsel %vm161_vm5, %v149_v38, %v164_v42 }
  0xfa   :  { %v173_v49 = vsel %vm161_vm5, %v155_v40, %v172_v47  ;;  %v170_v53 = vsel %vm160_vm6, %v167_v43, %v169_v48  ;;  %v166_v59 = vsel %vm160_vm6, %v163_v51, %v165_v52 }
  0xfb   :  { %v174_v54 = vsel %vm160_vm6, %v171_v44, %v173_v49  ;;  %v408_v57 = vmul.u32.u64.low %v175_v50, %v170_v53  ;;  %v409_v58 = vmul.u32.u64.high %v175_v50, %v170_v53, %v408_v57  ;;  %v182_v61 = vmul.u32 %v175_v50, %v166_v59 }
  0xfc   :  { %v405_v55 = vmul.u32.u64.low %v175_v50, %v174_v54  ;;  %v406_v56 = vmul.u32.u64.high %v175_v50, %v174_v54, %v405_v55 }
  0xfd   :  { %v185_v60 = vadd.s32 1, %v409_v58 }
  0xfe   :  { %vm184_vm7 = vc.u32 %v406_v56, %v408_v57  ;;  %v183_v10 = vadd.s32 %v408_v57, %v406_v56 }
  0xff   :  { %v186_v62 = vsel %vm184_vm7, %v185_v60, %v409_v58 }
 0x100   :  { %v187_v63 = vadd.s32 %v186_v62, %v182_v61 }
 0x102   :  { %v188_v0 = vadd.s32 536870912, %v187_v63 }
 0x104   :  { %v189_v1 = vshrl.u32 %v188_v0, 30 }
 0x106   :  { %v190_v2 = vshll.u32 %v189_v1, 30  ;;  %v213_v24 = vsub.s32 4, %v189_v1 }
 0x108   :  { %v191_v3 = vsub.s32 %v187_v63, %v190_v2  ;;  %v214_v27 = vsel %vm129_vm9, %v213_v24, %v189_v1 }
 0x109   :  { %v216_v28 = vsel %vm128_vm10, 0, %v214_v27 }
 0x10a   :  { %v193_v4 = vsub.s32 0, %v191_v3  ;;  %v220_v29 = vadd.s32 3, %v216_v28 }
 0x10c   :  { %v251_v5 = vmin.u32 %v193_v4, %v191_v3  ;;  %v221_v30 = vand.u32 3, %v220_v29 }
 0x10e   :  { %v195_v6 = vclz %v251_v5  ;;  %vm226_vm11 = vcmp.eq.s32.totalorder %v221_v30, 2  ;;  %vm223_vm12 = vcmp.eq.s32.totalorder %v221_v30, 0  ;;  %vm222_vm13 = vcmp.lt.s32.totalorder %v221_v30, 2 }
 0x110   :  { %v252_v7 = vadd.s32 4294967294, %v195_v6 }
 0x112   :  { %vm253_vm8 = vcmp.lt.s32.totalorder %v252_v7, 0 }
 0x113   :  { %v198_v9 = vsel %vm253_vm8, 0, %v252_v7 }
 0x114   :  { %v199_v11 = vsub.s32 32, %v198_v9  ;;  %v203_v12 = vsub.s32 4294967266, %v198_v9  ;;  %v200_v13 = vshll.u32 %v191_v3, %v198_v9 }
 0x116   :  { %v201_v15 = vshrl.u32 %v183_v10, %v199_v11  ;;  %v204_v16 = vadd.s32 127, %v203_v12 }
 0x118   :  { %v202_v17 = vor.u32 %v201_v15, %v200_v13  ;;  %v205_v18 = vshll.u32 %v204_v16, 23 }
 0x11a   :  { %v206_v19 = vor.u32 4788187, %v205_v18  ;;  %v209_v21 = vcvt.s32.f32 %v202_v17 }
 0x11c   :  { %v207_v20 = vand.u32 2147483647, %v206_v19 }
 0x11e   :  { %v210_v22 = vmul.f32 %v209_v21, %v207_v20 }
 0x120   :  { %v211_v23 = vxor.u32 2147483648, %v210_v22 }
 0x122   :  { %v212_v25 = vsel %vm129_vm9, %v211_v23, %v210_v22 }
 0x123   :  { %v215_v26 = vsel %vm128_vm10, %v399_v8, %v212_v25 }
 0x124   :  { %287 = vcosq.f32 %v215_v26 }
 0x125   :  { %289 = vsinq.f32 %v215_v26 }
 0x131   :  { %v288_v31 = vpop.eup %287 }
 0x132   :  { %v290_v32 = vpop.eup %289  ;;  %v227_v33 = vxor.u32 2147483648, %v288_v31 }
 0x133   :  { %v224_v34 = vxor.u32 2147483648, %v290_v32 }
 0x134   :  { %v228_v35 = vsel %vm226_vm11, %v227_v33, %v290_v32 }
 0x135   :  { %v225_v36 = vsel %vm223_vm12, %v288_v31, %v224_v34 }
 0x136   :  { %v229_v14 = vsel %vm222_vm13, %v225_v36, %v228_v35 }
 0x137   :  { %v230_v37 = vsel %vm219_vm14, nan, %v229_v14 }
 0x138   :  { %231 = vst [vmem:[#allocation7] sm:$0xff] %v230_v37 }
 0x139   :  { %342 = shalt.err (!%p339_p0)
}
 0x13a   :  { %241 = dma.vmem_to_hbm [thread:$0]  %s239_s24, 128, %s426_s3, [#allocation4]  }
 0x13b   :  { %355 = dma.done.wait [#allocation4], 128  }
 0x13c   :  { %356 = vsyncadd [#allocation4], 4294967168 }
 0x13d   :  { %245 = vsyncpa [#allocation3], 1 }
 0x13e   :  { %246 = vsyncpa [#allocation6], 1 }
 0x13f   :  { %247 = vsyncpa [#allocation4], 1 }

</bundles_post_ra>
